<compile_context>
chip_gen: v6e
topology: v6e:2x2x1
jax: 0.10.0
libtpu: 0.0.40
codegen_flags: <defaults>
</compile_context>

<pallas_src>
import functools

import jax
import jax.numpy as jnp
import numpy as np
from jax.experimental import pallas as pl
from jax.experimental.pallas import tpu as pltpu


def _anfis_kernel(xt_ref, c_ref, inv2s2_ref, wsum_ref, bsum_ref, out_ref, *,
                  n_rules: int):
    # xt_ref:     (D, TB) VMEM  inputs, batch on lanes
    # c_ref:      (D,)    SMEM  gaussian centers ('same' mode: one MF/feature)
    # inv2s2_ref: (D,)    SMEM  1 / (2 * sigma^2)
    # wsum_ref:   (D,)    SMEM  sum over rules of the consequence weights
    # bsum_ref:   (1,)    SMEM  sum over rules of the consequence bias
    # out_ref:    (1, TB) VMEM  aggregated output (lane-dense row)
    D = xt_ref.shape[0]
    xt = xt_ref[...]                                      # (D, TB)

    # Fused FuzzyLayer + RuleLayer exponent, and rule-summed ConsequenceLayer,
    # in one unrolled pass over the D (=4) features.  All scalars come from
    # SMEM and splat into the VPU ops for free.
    z = None       # gaussian exponent accumulator: sum_d (x_d-c_d)^2/(2σ_d^2)
    ysum = None    # (sum_r W_r) . x
    for d in range(D):
        xd = xt[d:d + 1, :]                               # (1, TB)
        diff = xd - c_ref[d]
        z_d = (diff * diff) * inv2s2_ref[d]
        y_d = xd * wsum_ref[d]
        z = z_d if z is None else z + z_d
        ysum = y_d if ysum is None else ysum + y_d

    fire = jnp.exp(-z)                                    # (1, TB)  rule strength
    ysum = ysum + bsum_ref[0]                             # + sum_r b_r

    # F.normalize(sy, p=1) with all R rule strengths equal to `fire`, exact:
    #   sy_n = fire / max(R*fire, 1e-12) = 1/R          if R*fire >= 1e-12
    #        = fire * 1e12                               otherwise (underflow)
    r = jnp.float32(n_rules)
    inv_r = jnp.float32(1.0 / n_rules)
    sy_n = jnp.where(fire * r >= jnp.float32(1e-12), inv_r,
                     fire * jnp.float32(1e12))            # (1, TB)

    out_ref[...] = sy_n * ysum                            # (1, TB)


def _round_up(n: int, m: int) -> int:
    return ((n + m - 1) // m) * m


def anfis_forward(x, c, sigma, w, b, *, block_b: int = 32768):
    """ANFIS forward.  x:(B,D), c/sigma:(1,D), w:(D,R), b:(1,R) -> (B,1)."""
    x = x.astype(jnp.float32)
    B, D = x.shape
    R = w.shape[1]

    # Batch tile on the lane axis: multiple of 128, large by default so the
    # kernel is HBM-bound rather than grid-step-overhead bound.  Keep at least
    # 2 grid steps when the batch allows so v7x can shard the "parallel" grid
    # across its two TensorCores.
    TB = min(block_b, _round_up(B, 128))
    if B > 256:
        TB = min(TB, _round_up((B + 1) // 2, 128))
    grid = (pl.cdiv(B, TB),)

    # Layout flip: batch on lanes.  NOTE: this transpose is one extra HBM pass
    # over x; a producer that already delivers x as (D, B) should skip it.
    xt = jnp.transpose(x)                                  # (D, B)

    sig = sigma.astype(jnp.float32)
    c_f = jnp.reshape(c.astype(jnp.float32), (D,))         # (D,)
    inv2s2 = jnp.reshape(1.0 / (2.0 * sig * sig), (D,))    # (D,)
    # aggregation='sum' with identical per-rule strengths:
    #   sum_r (W x + b)_r = (sum_r W_r) . x + sum_r b_r
    w_sum = jnp.sum(w.astype(jnp.float32), axis=1)          # (D,)
    b_sum = jnp.reshape(jnp.sum(b.astype(jnp.float32)), (1,))

    smem_spec = pl.BlockSpec(memory_space=pltpu.MemorySpace.SMEM)

    out = pl.pallas_call(
        functools.partial(_anfis_kernel, n_rules=R),
        out_shape=jax.ShapeDtypeStruct((1, B), jnp.float32),
        grid=grid,
        in_specs=[
            pl.BlockSpec((D, TB), lambda i: (0, i)),       # x tile (batch on lanes)
            smem_spec,                                     # centers
            smem_spec,                                     # 1/(2σ²)
            smem_spec,                                     # sum_r W_r
            smem_spec,                                     # sum_r b_r
        ],
        out_specs=pl.BlockSpec((1, TB), lambda i: (0, i)),
        compiler_params=pltpu.CompilerParams(
            dimension_semantics=("parallel",)),
    )(xt, c_f, inv2s2, w_sum, b_sum)

    return jnp.transpose(out)                              # (B, 1)


def anfis_reference(x, c, sigma, w, b):
    """Straight transcription of the torch module (fuzzy->rule->normalize->sum)."""
    mu = jnp.exp(-((x - c) ** 2) / (2.0 * sigma * sigma))   # (B, D)
    fire = jnp.prod(mu, axis=-1, keepdims=True)             # (B, 1)
    R = w.shape[1]
    sy = jnp.broadcast_to(fire, (x.shape[0], R))             # (B, R)
    y = x @ w + b                                            # (B, R)
    sy_n = sy / jnp.maximum(jnp.sum(jnp.abs(sy), axis=-1, keepdims=True), 1e-12)
    return jnp.sum(sy_n * y, axis=-1, keepdims=True)         # (B, 1)


if __name__ == "__main__":
    # Module config: d_input = 4, four gaussian membership functions with
    # n_members = 3 each  ->  n_rules = 3**4 = 81.
    D = 4
    N_MEMBERS = 3
    R = N_MEMBERS ** D  # 81

    key = jax.random.PRNGKey(0)
    kx1, kx2, kx3, kw, kb = jax.random.split(key, 5)

    # Deterministic parameter init.
    c = jnp.linspace(-1.0, 1.0, D, dtype=jnp.float32).reshape(1, D)
    sigma = jnp.full((1, D), 1.5, dtype=jnp.float32)
    bound = 1.0 / np.sqrt(D)   # nn.Linear(D, R) init range
    w = jax.random.uniform(kw, (D, R), dtype=jnp.float32, minval=-bound, maxval=bound)
    b = jax.random.uniform(kb, (1, R), dtype=jnp.float32, minval=-bound, maxval=bound)

    # Exact normalization now -> only fp-summation-order differences remain.
    RTOL, ATOL = 1e-4, 1e-5

    # Case 1: tiny batch (single partial block smaller than one lane group).
    B = 8
    x = jax.random.normal(kx1, (B, D), dtype=jnp.float32)
    out = jax.block_until_ready(anfis_forward(x, c, sigma, w, b))
    ref = anfis_reference(x, c, sigma, w, b)
    np.testing.assert_allclose(np.asarray(out), np.asarray(ref), rtol=RTOL, atol=ATOL)
    assert out.shape == (B, 1)

    # Case 2: non-multiple-of-128 batch with a small tile to exercise the
    # batch grid, resident SMEM params and the masked partial last block.
    B2 = 300
    x2 = jax.random.normal(kx2, (B2, D), dtype=jnp.float32)
    out2 = jax.block_until_ready(anfis_forward(x2, c, sigma, w, b, block_b=128))
    ref2 = anfis_reference(x2, c, sigma, w, b)
    np.testing.assert_allclose(np.asarray(out2), np.asarray(ref2), rtol=RTOL, atol=ATOL)
    assert out2.shape == (B2, 1)

    # Case 3: default (large-tile) path with >= 2 "parallel" grid steps.
    B3 = 2048
    x3 = jax.random.normal(kx3, (B3, D), dtype=jnp.float32)
    out3 = jax.block_until_ready(anfis_forward(x3, c, sigma, w, b))
    ref3 = anfis_reference(x3, c, sigma, w, b)
    np.testing.assert_allclose(np.asarray(out3), np.asarray(ref3), rtol=RTOL, atol=ATOL)
    assert out3.shape == (B3, 1)

    print("KERNEL_OK")
</pallas_src>

<mosaic_0001>
module attributes {stable_mosaic.version = 11 : i64} {
  func.func @_anfis_kernel(%arg0: i32, %arg1: memref<4x128xf32, #tpu.memory_space<vmem>>, %arg2: memref<4xf32, #tpu.memory_space<smem>>, %arg3: memref<4xf32, #tpu.memory_space<smem>>, %arg4: memref<4xf32, #tpu.memory_space<smem>>, %arg5: memref<1xf32, #tpu.memory_space<smem>>, %arg6: memref<1x128xf32, #tpu.memory_space<vmem>>) attributes {dimension_semantics = [#tpu.dimension_semantics<parallel>], iteration_bounds = array<i64: 1>, scalar_prefetch = 0 : i64, scratch_operands = 0 : i64, tpu.core_type = #tpu.core_type<tc>, window_params = [{transform_indices = @transform_0, window_bounds = array<i64: 4, 128>}, {transform_indices = @transform_1, window_bounds = array<i64: 4>}, {transform_indices = @transform_2, window_bounds = array<i64: 4>}, {transform_indices = @transform_3, window_bounds = array<i64: 4>}, {transform_indices = @transform_4, window_bounds = array<i64: 1>}, {transform_indices = @transform_5, window_bounds = array<i64: 1, 128>}]} {
    %c0 = arith.constant 0 : index
    %c0_0 = arith.constant 0 : index
    %0 = vector.load %arg1[%c0, %c0_0] : memref<4x128xf32, #tpu.memory_space<vmem>>, vector<4x128xf32>
    %1 = vector.extract_strided_slice %0 {offsets = [0, 0], sizes = [1, 128], strides = [1, 1]} : vector<4x128xf32> to vector<1x128xf32>
    %c0_1 = arith.constant 0 : index
    %2 = memref.load %arg2[%c0_1] : memref<4xf32, #tpu.memory_space<smem>>
    %3 = vector.broadcast %2 : f32 to vector<1x128xf32>
    %4 = arith.subf %1, %3 : vector<1x128xf32>
    %5 = arith.mulf %4, %4 : vector<1x128xf32>
    %c0_2 = arith.constant 0 : index
    %6 = memref.load %arg3[%c0_2] : memref<4xf32, #tpu.memory_space<smem>>
    %7 = vector.broadcast %6 : f32 to vector<1x128xf32>
    %8 = arith.mulf %5, %7 : vector<1x128xf32>
    %c0_3 = arith.constant 0 : index
    %9 = memref.load %arg4[%c0_3] : memref<4xf32, #tpu.memory_space<smem>>
    %10 = vector.broadcast %9 : f32 to vector<1x128xf32>
    %11 = arith.mulf %1, %10 : vector<1x128xf32>
    %12 = vector.extract_strided_slice %0 {offsets = [1, 0], sizes = [1, 128], strides = [1, 1]} : vector<4x128xf32> to vector<1x128xf32>
    %c1 = arith.constant 1 : index
    %13 = memref.load %arg2[%c1] : memref<4xf32, #tpu.memory_space<smem>>
    %14 = vector.broadcast %13 : f32 to vector<1x128xf32>
    %15 = arith.subf %12, %14 : vector<1x128xf32>
    %16 = arith.mulf %15, %15 : vector<1x128xf32>
    %c1_4 = arith.constant 1 : index
    %17 = memref.load %arg3[%c1_4] : memref<4xf32, #tpu.memory_space<smem>>
    %18 = vector.broadcast %17 : f32 to vector<1x128xf32>
    %19 = arith.mulf %16, %18 : vector<1x128xf32>
    %c1_5 = arith.constant 1 : index
    %20 = memref.load %arg4[%c1_5] : memref<4xf32, #tpu.memory_space<smem>>
    %21 = vector.broadcast %20 : f32 to vector<1x128xf32>
    %22 = arith.mulf %12, %21 : vector<1x128xf32>
    %23 = arith.addf %8, %19 : vector<1x128xf32>
    %24 = arith.addf %11, %22 : vector<1x128xf32>
    %25 = vector.extract_strided_slice %0 {offsets = [2, 0], sizes = [1, 128], strides = [1, 1]} : vector<4x128xf32> to vector<1x128xf32>
    %c2 = arith.constant 2 : index
    %26 = memref.load %arg2[%c2] : memref<4xf32, #tpu.memory_space<smem>>
    %27 = vector.broadcast %26 : f32 to vector<1x128xf32>
    %28 = arith.subf %25, %27 : vector<1x128xf32>
    %29 = arith.mulf %28, %28 : vector<1x128xf32>
    %c2_6 = arith.constant 2 : index
    %30 = memref.load %arg3[%c2_6] : memref<4xf32, #tpu.memory_space<smem>>
    %31 = vector.broadcast %30 : f32 to vector<1x128xf32>
    %32 = arith.mulf %29, %31 : vector<1x128xf32>
    %c2_7 = arith.constant 2 : index
    %33 = memref.load %arg4[%c2_7] : memref<4xf32, #tpu.memory_space<smem>>
    %34 = vector.broadcast %33 : f32 to vector<1x128xf32>
    %35 = arith.mulf %25, %34 : vector<1x128xf32>
    %36 = arith.addf %23, %32 : vector<1x128xf32>
    %37 = arith.addf %24, %35 : vector<1x128xf32>
    %38 = vector.extract_strided_slice %0 {offsets = [3, 0], sizes = [1, 128], strides = [1, 1]} : vector<4x128xf32> to vector<1x128xf32>
    %c3 = arith.constant 3 : index
    %39 = memref.load %arg2[%c3] : memref<4xf32, #tpu.memory_space<smem>>
    %40 = vector.broadcast %39 : f32 to vector<1x128xf32>
    %41 = arith.subf %38, %40 : vector<1x128xf32>
    %42 = arith.mulf %41, %41 : vector<1x128xf32>
    %c3_8 = arith.constant 3 : index
    %43 = memref.load %arg3[%c3_8] : memref<4xf32, #tpu.memory_space<smem>>
    %44 = vector.broadcast %43 : f32 to vector<1x128xf32>
    %45 = arith.mulf %42, %44 : vector<1x128xf32>
    %c3_9 = arith.constant 3 : index
    %46 = memref.load %arg4[%c3_9] : memref<4xf32, #tpu.memory_space<smem>>
    %47 = vector.broadcast %46 : f32 to vector<1x128xf32>
    %48 = arith.mulf %38, %47 : vector<1x128xf32>
    %49 = arith.addf %36, %45 : vector<1x128xf32>
    %50 = arith.addf %37, %48 : vector<1x128xf32>
    %cst = arith.constant 0.000000e+00 : f32
    %51 = vector.broadcast %cst : f32 to vector<1x128xf32>
    %52 = arith.subf %51, %49 : vector<1x128xf32>
    %53 = math.exp %52 : vector<1x128xf32>
    %c0_10 = arith.constant 0 : index
    %54 = memref.load %arg5[%c0_10] : memref<1xf32, #tpu.memory_space<smem>>
    %55 = vector.broadcast %54 : f32 to vector<1x128xf32>
    %56 = arith.addf %50, %55 : vector<1x128xf32>
    %cst_11 = arith.constant 8.100000e+01 : f32
    %57 = vector.broadcast %cst_11 : f32 to vector<1x128xf32>
    %58 = arith.mulf %53, %57 : vector<1x128xf32>
    %cst_12 = arith.constant 9.99999996E-13 : f32
    %59 = vector.broadcast %cst_12 : f32 to vector<1x128xf32>
    %60 = arith.cmpf oge, %58, %59 : vector<1x128xf32>
    %cst_13 = arith.constant 9.99999995E+11 : f32
    %61 = vector.broadcast %cst_13 : f32 to vector<1x128xf32>
    %62 = arith.mulf %53, %61 : vector<1x128xf32>
    %cst_14 = arith.constant 0.0123456791 : f32
    %63 = vector.broadcast %cst_14 : f32 to vector<1x128xf32>
    %64 = arith.select %60, %63, %62 : vector<1x128xi1>, vector<1x128xf32>
    %65 = arith.mulf %64, %56 : vector<1x128xf32>
    %c0_15 = arith.constant 0 : index
    %c0_16 = arith.constant 0 : index
    %66 = vector.load %arg6[%c0_15, %c0_16] : memref<1x128xf32, #tpu.memory_space<vmem>>, vector<1x128xf32>
    tpu.vector_store %arg6[%c0_15, %c0_16], %65 {strides = array<i32>} : memref<1x128xf32, #tpu.memory_space<vmem>>, vector<1x128xf32>,
    return
  }
  func.func @transform_0(%arg0: i32) -> (i32, i32) {
    %c0_i32 = arith.constant 0 : i32
    %c0_i32_0 = arith.constant 0 : i32
    return %c0_i32, %arg0 : i32, i32
  }
  func.func @transform_1(%arg0: i32) -> i32 {
    %c0_i32 = arith.constant 0 : i32
    %c0_i32_0 = arith.constant 0 : i32
    return %c0_i32 : i32
  }
  func.func @transform_2(%arg0: i32) -> i32 {
    %c0_i32 = arith.constant 0 : i32
    %c0_i32_0 = arith.constant 0 : i32
    return %c0_i32 : i32
  }
  func.func @transform_3(%arg0: i32) -> i32 {
    %c0_i32 = arith.constant 0 : i32
    %c0_i32_0 = arith.constant 0 : i32
    return %c0_i32 : i32
  }
  func.func @transform_4(%arg0: i32) -> i32 {
    %c0_i32 = arith.constant 0 : i32
    %c0_i32_0 = arith.constant 0 : i32
    return %c0_i32 : i32
  }
  func.func @transform_5(%arg0: i32) -> (i32, i32) {
    %c0_i32 = arith.constant 0 : i32
    %c0_i32_0 = arith.constant 0 : i32
    return %c0_i32, %arg0 : i32, i32
  }
}

</mosaic_0001>

<bundles_post_ra>
// kernel: tpu_custom_call.1
= control target key start
LH: loop header
LB: loop body
LE: loop exit
PB: predicated region body
PF: predicated region fallthrough
CT: control target
= control target key end

     0   :  { %11 = vsyncpa [#allocation4], 0  ;;  %s317_s0 = inlined_call_operand.hbm [shape: f32[4,8], index: 0, kind: input, shape index: {}]   ;;  %s318_s1 = inlined_call_operand.vmem [shape: f32[4], index: 1, kind: input, shape index: {}]   ;;  %s319_s2 = inlined_call_operand.vmem [shape: f32[4], index: 2, kind: input, shape index: {}]   ;;  %s320_s3 = inlined_call_operand.vmem [shape: f32[4], index: 3, kind: input, shape index: {}]   ;;  %s321_s4 = inlined_call_operand.<no memory space> [shape: f32[1], index: 4, kind: input, shape index: {}]   ;;  %s322_s5 = inlined_call_operand.hbm [shape: f32[1,8], index: 5, kind: output, shape index: {}]  }
   0x1   :  { %12 = vsyncpa [#allocation6], 0 }
   0x2   :  { %13 = vsyncpa [#allocation9], 0  ;;  %s41_s20 = sshll.u32 %s319_s2, 4  ;;  %s42_s20 = int_to_ptr.vmem [resolvable:$true] %s41_s20 }
   0x3   :  { %14 = vsyncpa [#allocation5], 0  ;;  %s180_s21 = scalar_lea.vmem %s42_s20, 16  ;;  %p185_p1 = scmp.lt.s32.totalorder %s42_s20, %s42_s20 }
   0x4   :  { %p181_p0 = scmp.ne.s32.totalorder %s42_s20, %s180_s21  ;;  %p186_p2 = scmp.lt.s32.totalorder %s180_s21, %s180_s21 }
   0x6   :  { %p187_p3 = por %p186_p2, %p185_p1 }
   0x8   :  { %p188_p4 = pnand %p187_p3, %p181_p0 }
   0xa   :  { %191 = shalt.err (!%p188_p4)
}
   0xb   :  { %s264_s22 = smov [#allocation8]   ;;  %s265_s23 = smov [#allocation3]  }
   0xc   :  { %44 = dma.vmem_to_smem %s42_s20, 16, %s264_s22, [#allocation9]  }
   0xd   :  { %s21_s24 = sshll.u32 %s265_s23, 4  ;;  %s31_s27 = sshll.u32 %s318_s1, 4  ;;  %s22_s24 = int_to_ptr.vmem [resolvable:$true] %s21_s24  ;;  %s32_s27 = int_to_ptr.vmem [resolvable:$true] %s31_s27 }
   0xe   :  { %s200_s2 = scalar_lea.vmem %s22_s24, 64  ;;  %p205_p6 = scmp.lt.s32.totalorder %s22_s24, %s22_s24 }
   0xf   :  { %p201_p5 = scmp.ne.s32.totalorder %s22_s24, %s200_s2  ;;  %p206_p7 = scmp.lt.s32.totalorder %s200_s2, %s200_s2 }
  0x11   :  { %p207_p8 = por %p206_p7, %p205_p6 }
  0x13   :  { %p208_p9 = pnand %p207_p8, %p201_p5 }
  0x15   :  { %211 = shalt.err (!%p208_p9)
}
  0x16   :  { %24 = dma.hbm_to_vmem [thread:$0]  %s317_s0, 64, %s22_s24, [#allocation4]  }
  0x17   :  { %s51_s7 = sshll.u32 %s320_s3, 4  ;;  %s212_s8 = scalar_lea.vmem %s32_s27, 16  ;;  %s52_s7 = int_to_ptr.vmem [resolvable:$true] %s51_s7 }
  0x18   :  { %p213_p10 = scmp.ne.s32.totalorder %s32_s27, %s212_s8  ;;  %p217_p11 = scmp.lt.s32.totalorder %s32_s27, %s32_s27 }
  0x19   :  { %p218_p12 = scmp.lt.s32.totalorder %s212_s8, %s212_s8 }
  0x1b   :  { %p219_p13 = por %p218_p12, %p217_p11 }
  0x1d   :  { %p220_p0 = pnand %p219_p13, %p213_p10 }
  0x1f   :  { %223 = shalt.err (!%p220_p0)
}
  0x20   :  { %s266_s1 = smov [#allocation7]   ;;  %s224_s9 = scalar_lea.vmem %s52_s7, 16 }
  0x21   :  { %34 = dma.vmem_to_smem %s32_s27, 16, %s266_s1, [#allocation6]  }
  0x22   :  { %p225_p1 = scmp.ne.s32.totalorder %s52_s7, %s224_s9  ;;  %p229_p2 = scmp.lt.s32.totalorder %s52_s7, %s52_s7 }
  0x23   :  { %p230_p3 = scmp.lt.s32.totalorder %s224_s9, %s224_s9 }
  0x25   :  { %p231_p4 = por %p230_p3, %p229_p2 }
  0x27   :  { %p232_p5 = pnand %p231_p4, %p225_p1 }
  0x29   :  { %235 = shalt.err (!%p232_p5)
}
  0x2a   :  { %s267_s0 = smov [#allocation10]  }
  0x2b   :  { %54 = dma.vmem_to_smem %s52_s7, 16, %s267_s0, [#allocation9]  }
  0x2c   :  { %256 = dma.done.wait [#allocation4], 64  }
  0x2d   :  { %257 = vsyncadd [#allocation4], 4294967232 }
  0x2e   :  { %258 = dma.done.wait [#allocation6], 16  }
  0x2f   :  { %259 = vsyncadd [#allocation6], 4294967280 }
  0x30   :  { %260 = dma.done.wait [#allocation9], 32  }
  0x31   :  { %261 = vsyncadd [#allocation9], 4294967264 }
  0x32   :  { %69 = sfence }
  0x33   :  { %s71_s3 = sld [smem:[#allocation7]]  ;;  %v70_v0 = vld [vmem:[#allocation3] sm:$0xf]  ;;  %v139_v43 = vstv %s321_s4  ;;  %s268_s23 = smov [#allocation11]  }
  0x34   :  { %s75_s10 = sld [smem:[#allocation8]]  ;;  %s153_s24 = sshll.u32 %s268_s23, 4  ;;  %s154_s24 = int_to_ptr.vmem [resolvable:$true] %s153_s24 }
  0x35   :  { %s164_s11 = sld [smem:[#allocation7 + $0x1]]  ;;  %s236_s25 = scalar_lea.vmem %s154_s24, 16 }
  0x36   :  { %s165_s12 = sld [smem:[#allocation8 + $0x1]]  ;;  %p237_p6 = scmp.ne.s32.totalorder %s154_s24, %s236_s25 }
  0x37   :  { %s167_s13 = sld [smem:[#allocation7 + $0x2]]  ;;  %s240_s26 = scalar_lea.vmem %s154_s24, 32 }
  0x38   :  { %s168_s14 = sld [smem:[#allocation8 + $0x2]]  ;;  %p241_p7 = scmp.lt.s32.totalorder %s154_s24, %s154_s24 }
  0x39   :  { %v72_v1 = vstv %s71_s3  ;;  %s170_s15 = sld [smem:[#allocation7 + $0x3]]  ;;  %p242_p8 = scmp.lt.s32.totalorder %s240_s26, %s236_s25 }
  0x3a   :  { %v73_v2 = vsub.f32 %v70_v0, %v72_v1  ;;  %s171_s16 = sld [smem:[#allocation8 + $0x3]]  ;;  %v76_v6 = vstv %s75_s10 }
  0x3b   :  { %v82_v3 = vstv %s164_s11  ;;  %s166_s17 = sld [smem:[#allocation10 + $0x1]]  ;;  %p243_p9 = por %p242_p8, %p241_p7 }
  0x3c   :  { %v74_v4 = vmul.f32 %v73_v2, %v73_v2  ;;  %v83_v5 = vsub.f32 %v70_v0, %v82_v3  ;;  %v86_v7 = vstv %s165_s12  ;;  %s78_s18 = sld [smem:[#allocation10]] }
  0x3d   :  { %v100_v9 = vstv %s167_s13  ;;  %s169_s19 = sld [smem:[#allocation10 + $0x2]]  ;;  %p244_p10 = pnand %p243_p9, %p237_p6 }
  0x3e   :  { %v84_v8 = vmul.f32 %v83_v5, %v83_v5  ;;  %v101_v10 = vsub.f32 %v70_v0, %v100_v9  ;;  %v77_v11 = vmul.f32 %v76_v6, %v74_v4  ;;  %v104_v13 = vstv %s168_s14  ;;  %s172_s20 = sld [smem:[#allocation10 + $0x3]] }
  0x3f   :  { %v118_v15 = vstv %s170_s15 }
  0x40   :  { %v87_v12 = vmul.f32 %v86_v7, %v84_v8  ;;  %v102_v14 = vmul.f32 %v101_v10, %v101_v10  ;;  %v119_v17 = vsub.f32 %v70_v0, %v118_v15  ;;  %v122_v19 = vstv %s171_s16 }
  0x41   :  { %v89_v24 = vstv %s166_s17 }
  0x42   :  { %v92_v16 = vrot.slane %v87_v12, 1  ;;  %v105_v18 = vmul.f32 %v104_v13, %v102_v14  ;;  %v120_v21 = vmul.f32 %v119_v17, %v119_v17  ;;  %v90_v27 = vmul.f32 %v89_v24, %v70_v0 }
  0x43   :  { %v79_v29 = vstv %s78_s18  ;;  %v107_v30 = vstv %s169_s19 }
  0x44   :  { %v94_v20 = vadd.f32 %v92_v16, %v77_v11  ;;  %v110_v22 = vrot.slane %v105_v18, 2  ;;  %v123_v23 = vmul.f32 %v122_v19, %v120_v21  ;;  %v80_v32 = vmul.f32 %v79_v29, %v70_v0 }
  0x45   :  { %v96_v33 = vrot.slane %v90_v27, 1  ;;  %v108_v34 = vmul.f32 %v107_v30, %v70_v0  ;;  %v125_v36 = vstv %s172_s20 }
  0x46   :  { %v112_v25 = vadd.f32 %v110_v22, %v94_v20  ;;  %v128_v26 = vrot.slane %v123_v23, 3  ;;  %v126_v39 = vmul.f32 %v125_v36, %v70_v0 }
  0x47   :  { %v98_v37 = vadd.f32 %v96_v33, %v80_v32  ;;  %v114_v38 = vrot.slane %v108_v34, 2 }
  0x48   :  { %v130_v28 = vadd.f32 %v128_v26, %v112_v25  ;;  %v132_v41 = vrot.slane %v126_v39, 3 }
  0x49   :  { %v116_v40 = vadd.f32 %v114_v38, %v98_v37 }
  0x4a   :  { %v135_v31 = vsub.f32 0.0, %v130_v28 }
  0x4b   :  { %v134_v42 = vadd.f32 %v132_v41, %v116_v40 }
  0x4c   :  { %v136_v35 = vmul.f32 1.442695, %v135_v31 }
  0x4d   :  { %v140_v45 = vadd.f32 %v139_v43, %v134_v42 }
  0x4e   :  { %178 = vpow2.f32 %v136_v35 }
  0x5b   :  { %v179_v44 = vpop.eup %178 }
  0x5c   :  { %v141_v46 = vmul.f32 81.0, %v179_v44  ;;  %v143_v47 = vmul.f32 1e+12, %v179_v44 }
  0x5e   :  { %vm142_vm0 = vcmp.ge.f32.partialorder %v141_v46, 1e-12 }
  0x5f   :  { %v144_v48 = vsel %vm142_vm0, 0.012345679, %v143_v47 }
  0x60   :  { %v145_v49 = vmul.f32 %v144_v48, %v140_v45 }
  0x62   :  { %146 = vst [vmem:[#allocation11] sm:$0x1] %v145_v49 }
  0x63   :  { %247 = shalt.err (!%p244_p10)
}
  0x64   :  { %156 = dma.vmem_to_hbm [thread:$0]  %s154_s24, 16, %s322_s5, [#allocation5]  }
  0x65   :  { %262 = dma.done.wait [#allocation5], 16  }
  0x66   :  { %263 = vsyncadd [#allocation5], 4294967280 }
  0x67   :  { %160 = vsyncpa [#allocation4], 1 }
  0x68   :  { %161 = vsyncpa [#allocation5], 1 }
  0x69   :  { %162 = vsyncpa [#allocation6], 1 }
  0x6a   :  { %163 = vsyncpa [#allocation9], 1 }

</bundles_post_ra>
